<compile_context>
chip_gen: v7x
topology: tpu7x:2x2x1
jax: 0.10.0
libtpu: 0.0.40
codegen_flags: <defaults>
</compile_context>

<pallas_src>
import functools
import math

import jax
import jax.numpy as jnp
from jax.experimental import pallas as pl
from jax.experimental.pallas import tpu as pltpu


def _round_up(x, m):
    return ((x + m - 1) // m) * m


def _cdiv(a, b):
    return -(-a // b)


# ------------------------------ kernel bodies --------------------------------
def _activate(logits, act):
    """Activation epilogue on f32 logits (stays in VMEM; VPU/EUP/XLU work)."""
    if act == "softmax":
        m = jnp.max(logits, axis=-1, keepdims=True)        # XLU reduce
        e = jnp.exp(logits - m)                            # EUP
        s = jnp.sum(e, axis=-1, keepdims=True)
        r = pl.reciprocal(s, approx=True)                  # EUP slot (free-ish)
        r = r * (2.0 - s * r)                              # one Newton step
        return e * r
    elif act == "sigmoid":
        return jax.nn.sigmoid(logits)
    else:                                                  # identity
        return logits


def _head_kernel_single(x_ref, w_ref, b_ref, o_ref, *, act):
    """Whole (padded) class dim in one block: weight resident across the grid."""
    logits = jnp.dot(x_ref[...].astype(w_ref.dtype), w_ref[...],
                     preferred_element_type=jnp.float32)   # MXU, f32 accumulate
    logits = logits + b_ref[...]                           # VPU
    o_ref[...] = _activate(logits, act).astype(o_ref.dtype)


def _head_kernel_tiled(x_ref, w_ref, b_ref, o_ref, acc_ref, *, act, tn, n_class):
    """Class-tiled path: weight streams (K, tn) blocks; logits accumulate in an
    f32 VMEM scratch; activation + single output store at the last class step."""
    j = pl.program_id(1)
    logits = jnp.dot(x_ref[...].astype(w_ref.dtype), w_ref[...],
                     preferred_element_type=jnp.float32)
    logits = logits + b_ref[...]

    # Statically-unrolled column placement: every store uses a static,
    # 128-aligned lane offset (no dynamic minor-dim slice needed).
    for jj in range(n_class):
        @pl.when(j == jj)
        def _(jj=jj):
            acc_ref[:, jj * tn:(jj + 1) * tn] = logits

    @pl.when(j == n_class - 1)
    def _():
        o_ref[...] = _activate(acc_ref[...], act).astype(o_ref.dtype)


# ------------------------------ param caching --------------------------------
def prepare_head_params(weight, bias, *, compute_dtype=jnp.bfloat16,
                        weight_vmem_budget=8 * 1024 * 1024, tn_pref=512):
    """Pad/transpose the Linear params ONCE (cache the result; not per forward).

    weight: (num_classes, dim_in) in PyTorch nn.Linear layout; bias: (num_classes,).
    Returns (w_p, b_p, tn):
      w_p: (dim_in, Dp) compute_dtype, class columns padded with zeros.
      b_p: (1, Dp) f32, padded class columns set to -1e30 so softmax ignores them
           (safe for bf16/f32 outputs; padded columns are sliced off anyway).
      tn : class tile width; Dp is always a multiple of tn.
    """
    D, K = weight.shape
    itemsize = jnp.dtype(compute_dtype).itemsize

    Dp = _round_up(D, 128)
    if K * Dp * itemsize <= weight_vmem_budget:
        tn = Dp                                    # single resident weight block
    else:
        # Stream the weight in (K, tn) blocks; tn multiple of 256 (MXU width on
        # v6e/v7x); shrink until a double-buffered block fits the budget.
        tn = max(256, _round_up(min(tn_pref, Dp), 256))
        while tn > 256 and 2 * K * tn * itemsize > weight_vmem_budget:
            tn -= 256
        Dp = _round_up(D, tn)                      # class grid divides evenly

    w_p = jnp.zeros((K, Dp), compute_dtype).at[:, :D].set(
        weight.T.astype(compute_dtype))
    b_p = jnp.full((1, Dp), -1e30, jnp.float32).at[0, :D].set(
        bias.astype(jnp.float32))
    return w_p, b_p, tn


# --------------------------------- forward -----------------------------------
def transformer_head_forward(x, w_p, b_p, num_classes, tn, *, act="softmax",
                             out_dtype=None, tm_max=256, slice_output=True,
                             resident_single_buffer=True):
    """Fused Linear + bias + activation head.

    x: (N, dim_in).  w_p/b_p/tn come from prepare_head_params (cached).
    Returns (N, num_classes); pass slice_output=False to keep the (N, Dp)
    class-padded slab and skip the extra HBM pass of the column slice.
    """
    N, K = x.shape
    Kw, Dp = w_p.shape
    assert Kw == K, (Kw, K)
    assert Dp % tn == 0
    n_class = Dp // tn

    if out_dtype is None:
        # Bounded activations -> bf16 writeback halves output HBM traffic.
        out_dtype = jnp.bfloat16 if act in ("softmax", "sigmoid") else x.dtype

    x_it = jnp.dtype(x.dtype).itemsize
    w_it = jnp.dtype(w_p.dtype).itemsize
    o_it = jnp.dtype(out_dtype).itemsize

    # Row tiling: cap tm so the resident (tm, Dp) out block / acc / temporaries
    # stay modest; ragged cdiv blocks (no row padding copy); >= 2 row tiles when
    # N > 8 so both v7x TensorCores get work.
    tm_cap = max(8, ((16 << 20) // max(Dp * 16, 1)) // 8 * 8)
    tm_limit = max(8, min(tm_max, tm_cap))
    n_row = max(2, _cdiv(N, tm_limit)) if N > 8 else 1
    tm = min(tm_limit, _round_up(_cdiv(N, n_row), 8))
    n_row = _cdiv(N, tm)

    if n_class == 1:
        kernel = functools.partial(_head_kernel_single, act=act)
        scratch = []
    else:
        kernel = functools.partial(_head_kernel_tiled, act=act, tn=tn,
                                   n_class=n_class)
        scratch = [pltpu.VMEM((tm, Dp), jnp.float32)]

    # VMEM estimate (conservative: double-buffered everything + f32 temps);
    # raise the scoped limit only when needed, capped for v7x's 64 MiB.
    est = (2 * tm * K * x_it + 2 * K * tn * w_it + 2 * tn * 4
           + 2 * tm * Dp * o_it
           + (tm * Dp * 4 if n_class > 1 else 0)
           + 3 * tm * Dp * 4)
    cp = dict(dimension_semantics=("parallel", "arbitrary"))
    if int(est * 1.5) > (32 << 20):
        cp["vmem_limit_bytes"] = min(64 << 20, int(est * 1.5))

    def _build_and_run(single_buffer):
        mode = dict(pipeline_mode=pl.Buffered(1)) if single_buffer else {}
        # K at full extent: legal block dim even when K % 128 != 0.
        x_spec = pl.BlockSpec((tm, K), lambda i, j: (i, 0))
        w_spec = pl.BlockSpec((K, tn), lambda i, j: (0, j), **mode)
        b_spec = pl.BlockSpec((1, tn), lambda i, j: (0, j), **mode)
        out_spec = pl.BlockSpec((tm, Dp), lambda i, j: (i, 0))
        return pl.pallas_call(
            kernel,
            out_shape=jax.ShapeDtypeStruct((N, Dp), out_dtype),
            grid_spec=pltpu.PrefetchScalarGridSpec(
                num_scalar_prefetch=0,
                grid=(n_row, n_class),
                in_specs=[x_spec, w_spec, b_spec],
                out_specs=out_spec,
                scratch_shapes=scratch),
            compiler_params=pltpu.CompilerParams(**cp),
        )(x, w_p, b_p)

    want_single_buffer = (n_class == 1) and resident_single_buffer
    if want_single_buffer:
        try:
            out = _build_and_run(True)
        except Exception:
            # Fallback if pl.Buffered(1) is rejected by this jax/Mosaic version.
            out = _build_and_run(False)
    else:
        out = _build_and_run(False)

    if slice_output and Dp != num_classes:
        # TODO(synk): consumers that tolerate the lane-padded slab should pass
        # slice_output=False to skip this extra HBM pass over the output.
        out = out[:, :num_classes]
    return out


# ----------------------------- module equivalent ------------------------------
class TransformerBasicHeadPallas:
    """JAX/Pallas equivalent of the PyTorch TransformerBasicHead forward."""

    def __init__(self, dim_in, num_classes, dropout_rate=0.0, act_func="softmax",
                 key=None, compute_dtype=jnp.bfloat16, out_dtype=None,
                 weight_vmem_budget=8 * 1024 * 1024, tn_pref=512):
        if isinstance(num_classes, (list, tuple)):
            assert len(num_classes) == 1
            num_classes = num_classes[0]
        if act_func not in ("softmax", "sigmoid", None):
            raise NotImplementedError(
                "{} is not supported as an activation function.".format(act_func))
        if key is None:
            key = jax.random.PRNGKey(0)
        self.dim_in = dim_in
        self.num_classes = num_classes
        self.dropout_rate = dropout_rate
        self.act_func = act_func
        self.out_dtype = out_dtype

        # nn.Linear default init: U(-1/sqrt(dim_in), 1/sqrt(dim_in)).
        kw, kb = jax.random.split(key)
        bound = 1.0 / math.sqrt(dim_in)
        self.weight = jax.random.uniform(
            kw, (num_classes, dim_in), jnp.float32, -bound, bound)
        self.bias = jax.random.uniform(
            kb, (num_classes,), jnp.float32, -bound, bound)

        # Pad/transpose once and cache (no per-call weight transform traffic).
        self.w_p, self.b_p, self.tn = prepare_head_params(
            self.weight, self.bias, compute_dtype=compute_dtype,
            weight_vmem_budget=weight_vmem_budget, tn_pref=tn_pref)

    def __call__(self, x, training=False, dropout_key=None):
        if training and self.dropout_rate > 0.0:
            # Dropout is training-only glue outside the hot matmul path.
            assert dropout_key is not None
            keep = 1.0 - self.dropout_rate
            mask = jax.random.bernoulli(dropout_key, keep, x.shape)
            x = jnp.where(mask, x / keep, jnp.zeros_like(x))
        # PyTorch applies the activation only in eval mode.
        act = self.act_func if not training else None
        return transformer_head_forward(
            x, self.w_p, self.b_p, self.num_classes, self.tn,
            act=act, out_dtype=self.out_dtype)


# ----------------------------------- main --------------------------------------
if __name__ == "__main__":
    key = jax.random.PRNGKey(0)
    kx, kp1, kp2 = jax.random.split(key, 3)

    N, dim_in = 6, 32
    x = jax.random.normal(kx, (N, dim_in), dtype=jnp.float32)
    # Reference uses the same bf16-rounded inputs as the kernel (f32 accumulate).
    xb = x.astype(jnp.bfloat16).astype(jnp.float32)

    # ---- Test 1: small head -> single resident weight block path -------------
    num_classes = 10
    head = TransformerBasicHeadPallas(dim_in, num_classes, dropout_rate=0.0,
                                      act_func="softmax", key=kp1)
    out = jax.block_until_ready(head(x))           # eval-mode forward

    wb = head.weight.astype(jnp.bfloat16).astype(jnp.float32)
    ref = jax.nn.softmax(xb @ wb.T + head.bias, axis=-1)
    assert out.shape == (N, num_classes), out.shape
    assert out.dtype == jnp.bfloat16, out.dtype
    out32 = out.astype(jnp.float32)
    assert jnp.max(jnp.abs(out32 - ref)) < 2e-2
    assert jnp.allclose(jnp.sum(out32, axis=-1), 1.0, atol=2e-2)

    # ---- Test 2: force the class-tiled (weight-streaming) path ---------------
    num_classes2 = 300
    head2 = TransformerBasicHeadPallas(dim_in, num_classes2, dropout_rate=0.0,
                                       act_func="softmax", key=kp2,
                                       weight_vmem_budget=4096, tn_pref=256)
    out2 = jax.block_until_ready(head2(x))
    wb2 = head2.weight.astype(jnp.bfloat16).astype(jnp.float32)
    ref2 = jax.nn.softmax(xb @ wb2.T + head2.bias, axis=-1)
    assert out2.shape == (N, num_classes2), out2.shape
    out232 = out2.astype(jnp.float32)
    assert jnp.max(jnp.abs(out232 - ref2)) < 2e-2
    assert jnp.allclose(jnp.sum(out232, axis=-1), 1.0, atol=2e-2)

    print("KERNEL_OK")
</pallas_src>

<mosaic_0001>
module attributes {stable_mosaic.version = 11 : i64} {
  func.func @_head_kernel_single(%arg0: i32, %arg1: i32, %arg2: memref<8x32xf32, #tpu.memory_space<vmem>>, %arg3: memref<32x128xbf16, #tpu.memory_space<vmem>>, %arg4: memref<1x128xf32, #tpu.memory_space<vmem>>, %arg5: memref<8x128xbf16, #tpu.memory_space<vmem>>) attributes {dimension_semantics = [#tpu.dimension_semantics<parallel>, #tpu.dimension_semantics<arbitrary>], iteration_bounds = array<i64: 1, 1>, scalar_prefetch = 0 : i64, scratch_operands = 0 : i64, tpu.core_type = #tpu.core_type<tc>, window_params = [{transform_indices = @transform_0, window_bounds = array<i64: 8, 32>}, {pipeline_mode = #tpu.pipeline_mode<synchronous>, transform_indices = @transform_1, window_bounds = array<i64: 32, 128>}, {pipeline_mode = #tpu.pipeline_mode<synchronous>, transform_indices = @transform_2, window_bounds = array<i64: 1, 128>}, {transform_indices = @transform_3, window_bounds = array<i64: 8, 128>}]} {
    %c0 = arith.constant 0 : index
    %c0_0 = arith.constant 0 : index
    %0 = vector.load %arg2[%c0, %c0_0] : memref<8x32xf32, #tpu.memory_space<vmem>>, vector<8x32xf32>
    %1 = arith.truncf %0 : vector<8x32xf32> to vector<8x32xbf16>
    %c0_1 = arith.constant 0 : index
    %c0_2 = arith.constant 0 : index
    %2 = vector.load %arg3[%c0_1, %c0_2] : memref<32x128xbf16, #tpu.memory_space<vmem>>, vector<32x128xbf16>
    %cst = arith.constant dense<0.000000e+00> : vector<8x128xf32>
    %3 = tpu.matmul %1, %2, %cst {dimension_numbers = #tpu.dot_dimension_numbers<[1], [0], [0], [1], [0, 0, 1, 1], [], []>} : vector<8x32xbf16>, vector<32x128xbf16>, vector<8x128xf32> -> vector<8x128xf32>
    %c0_3 = arith.constant 0 : index
    %c0_4 = arith.constant 0 : index
    %4 = vector.load %arg4[%c0_3, %c0_4] : memref<1x128xf32, #tpu.memory_space<vmem>>, vector<1x128xf32>
    %5 = vector.broadcast %4 : vector<1x128xf32> to vector<8x128xf32>
    %6 = arith.addf %3, %5 : vector<8x128xf32>
    %cst_5 = arith.constant dense<0xFF800000> : vector<8xf32>
    %7 = vector.multi_reduction <maximumf>, %6, %cst_5 [1] : vector<8x128xf32> to vector<8xf32>
    %8 = vector.shape_cast %7 : vector<8xf32> to vector<8x1xf32>
    %9 = vector.broadcast %8 : vector<8x1xf32> to vector<8x128xf32>
    %10 = arith.subf %6, %9 : vector<8x128xf32>
    %11 = math.exp %10 : vector<8x128xf32>
    %cst_6 = arith.constant dense<0.000000e+00> : vector<8xf32>
    %12 = vector.multi_reduction <add>, %11, %cst_6 [1] : vector<8x128xf32> to vector<8xf32>
    %13 = vector.shape_cast %12 : vector<8xf32> to vector<8x1xf32>
    %14 = tpu.reciprocal %13 {approx = true} : vector<8x1xf32> -> vector<8x1xf32>
    %15 = arith.mulf %13, %14 : vector<8x1xf32>
    %cst_7 = arith.constant 2.000000e+00 : f32
    %16 = vector.broadcast %cst_7 : f32 to vector<8x1xf32>
    %17 = arith.subf %16, %15 : vector<8x1xf32>
    %18 = arith.mulf %14, %17 : vector<8x1xf32>
    %19 = vector.broadcast %18 : vector<8x1xf32> to vector<8x128xf32>
    %20 = arith.mulf %11, %19 : vector<8x128xf32>
    %21 = arith.truncf %20 : vector<8x128xf32> to vector<8x128xbf16>
    %c0_8 = arith.constant 0 : index
    %c0_9 = arith.constant 0 : index
    %22 = vector.load %arg5[%c0_8, %c0_9] : memref<8x128xbf16, #tpu.memory_space<vmem>>, vector<8x128xbf16>
    tpu.vector_store %arg5[%c0_8, %c0_9], %21 {strides = array<i32>} : memref<8x128xbf16, #tpu.memory_space<vmem>>, vector<8x128xbf16>,
    return
  }
  func.func @transform_0(%arg0: i32, %arg1: i32) -> (i32, i32) {
    %c0_i32 = arith.constant 0 : i32
    %c0_i32_0 = arith.constant 0 : i32
    return %arg0, %c0_i32 : i32, i32
  }
  func.func @transform_1(%arg0: i32, %arg1: i32) -> (i32, i32) {
    %c0_i32 = arith.constant 0 : i32
    %c0_i32_0 = arith.constant 0 : i32
    return %c0_i32, %arg1 : i32, i32
  }
  func.func @transform_2(%arg0: i32, %arg1: i32) -> (i32, i32) {
    %c0_i32 = arith.constant 0 : i32
    %c0_i32_0 = arith.constant 0 : i32
    return %c0_i32, %arg1 : i32, i32
  }
  func.func @transform_3(%arg0: i32, %arg1: i32) -> (i32, i32) {
    %c0_i32 = arith.constant 0 : i32
    %c0_i32_0 = arith.constant 0 : i32
    return %arg0, %c0_i32 : i32, i32
  }
}

module attributes {stable_mosaic.version = 11 : i64} {
  func.func @_head_kernel_single(%arg0: i32, %arg1: i32, %arg2: memref<8x32xf32, #tpu.memory_space<vmem>>, %arg3: memref<32x128xbf16, #tpu.memory_space<vmem>>, %arg4: memref<1x128xf32, #tpu.memory_space<vmem>>, %arg5: memref<8x128xbf16, #tpu.memory_space<vmem>>) attributes {dimension_semantics = [#tpu.dimension_semantics<parallel>, #tpu.dimension_semantics<arbitrary>], iteration_bounds = array<i64: 1, 1>, scalar_prefetch = 0 : i64, scratch_operands = 0 : i64, tpu.core_type = #tpu.core_type<tc>, window_params = [{transform_indices = @transform_0, window_bounds = array<i64: 8, 32>}, {transform_indices = @transform_1, window_bounds = array<i64: 32, 128>}, {transform_indices = @transform_2, window_bounds = array<i64: 1, 128>}, {transform_indices = @transform_3, window_bounds = array<i64: 8, 128>}]} {
    %c0 = arith.constant 0 : index
    %c0_0 = arith.constant 0 : index
    %0 = vector.load %arg2[%c0, %c0_0] : memref<8x32xf32, #tpu.memory_space<vmem>>, vector<8x32xf32>
    %1 = arith.truncf %0 : vector<8x32xf32> to vector<8x32xbf16>
    %c0_1 = arith.constant 0 : index
    %c0_2 = arith.constant 0 : index
    %2 = vector.load %arg3[%c0_1, %c0_2] : memref<32x128xbf16, #tpu.memory_space<vmem>>, vector<32x128xbf16>
    %cst = arith.constant dense<0.000000e+00> : vector<8x128xf32>
    %3 = tpu.matmul %1, %2, %cst {dimension_numbers = #tpu.dot_dimension_numbers<[1], [0], [0], [1], [0, 0, 1, 1], [], []>} : vector<8x32xbf16>, vector<32x128xbf16>, vector<8x128xf32> -> vector<8x128xf32>
    %c0_3 = arith.constant 0 : index
    %c0_4 = arith.constant 0 : index
    %4 = vector.load %arg4[%c0_3, %c0_4] : memref<1x128xf32, #tpu.memory_space<vmem>>, vector<1x128xf32>
    %5 = vector.broadcast %4 : vector<1x128xf32> to vector<8x128xf32>
    %6 = arith.addf %3, %5 : vector<8x128xf32>
    %cst_5 = arith.constant dense<0xFF800000> : vector<8xf32>
    %7 = vector.multi_reduction <maximumf>, %6, %cst_5 [1] : vector<8x128xf32> to vector<8xf32>
    %8 = vector.shape_cast %7 : vector<8xf32> to vector<8x1xf32>
    %9 = vector.broadcast %8 : vector<8x1xf32> to vector<8x128xf32>
    %10 = arith.subf %6, %9 : vector<8x128xf32>
    %11 = math.exp %10 : vector<8x128xf32>
    %cst_6 = arith.constant dense<0.000000e+00> : vector<8xf32>
    %12 = vector.multi_reduction <add>, %11, %cst_6 [1] : vector<8x128xf32> to vector<8xf32>
    %13 = vector.shape_cast %12 : vector<8xf32> to vector<8x1xf32>
    %14 = tpu.reciprocal %13 {approx = true} : vector<8x1xf32> -> vector<8x1xf32>
    %15 = arith.mulf %13, %14 : vector<8x1xf32>
    %cst_7 = arith.constant 2.000000e+00 : f32
    %16 = vector.broadcast %cst_7 : f32 to vector<8x1xf32>
    %17 = arith.subf %16, %15 : vector<8x1xf32>
    %18 = arith.mulf %14, %17 : vector<8x1xf32>
    %19 = vector.broadcast %18 : vector<8x1xf32> to vector<8x128xf32>
    %20 = arith.mulf %11, %19 : vector<8x128xf32>
    %21 = arith.truncf %20 : vector<8x128xf32> to vector<8x128xbf16>
    %c0_8 = arith.constant 0 : index
    %c0_9 = arith.constant 0 : index
    %22 = vector.load %arg5[%c0_8, %c0_9] : memref<8x128xbf16, #tpu.memory_space<vmem>>, vector<8x128xbf16>
    tpu.vector_store %arg5[%c0_8, %c0_9], %21 {strides = array<i32>} : memref<8x128xbf16, #tpu.memory_space<vmem>>, vector<8x128xbf16>,
    return
  }
  func.func @transform_0(%arg0: i32, %arg1: i32) -> (i32, i32) {
    %c0_i32 = arith.constant 0 : i32
    %c0_i32_0 = arith.constant 0 : i32
    return %arg0, %c0_i32 : i32, i32
  }
  func.func @transform_1(%arg0: i32, %arg1: i32) -> (i32, i32) {
    %c0_i32 = arith.constant 0 : i32
    %c0_i32_0 = arith.constant 0 : i32
    return %c0_i32, %arg1 : i32, i32
  }
  func.func @transform_2(%arg0: i32, %arg1: i32) -> (i32, i32) {
    %c0_i32 = arith.constant 0 : i32
    %c0_i32_0 = arith.constant 0 : i32
    return %c0_i32, %arg1 : i32, i32
  }
  func.func @transform_3(%arg0: i32, %arg1: i32) -> (i32, i32) {
    %c0_i32 = arith.constant 0 : i32
    %c0_i32_0 = arith.constant 0 : i32
    return %arg0, %c0_i32 : i32, i32
  }
}

</mosaic_0001>

<bundles_post_ra>
// kernel: tpu_custom_call.1
= control target key start
LH: loop header
LB: loop body
LE: loop exit
PB: predicated region body
PF: predicated region fallthrough
CT: control target
= control target key end

     0   :  { %8 = vsyncpa [#allocation3], 0  ;;  %s314_s0 = inlined_call_operand.hbm [shape: f32[6,32], index: 0, kind: input, shape index: {}]   ;;  %s315_s1 = inlined_call_operand.hbm [shape: bf16[32,128], index: 1, kind: input, shape index: {}]   ;;  %s316_s2 = inlined_call_operand.vmem [shape: f32[1,128], index: 2, kind: input, shape index: {}]   ;;  %s317_s3 = inlined_call_operand.hbm [shape: bf16[6,128], index: 3, kind: output, shape index: {}]  }
   0x1   :  { %9 = vsyncpa [#allocation6], 0 }
   0x2   :  { %10 = vsyncpa [#allocation4], 0  ;;  %s241_s12 = smov [#allocation2]   ;;  %s242_s14 = smov [#allocation5]  }
   0x3   :  { %s17_s13 = sshll.u32 %s241_s12, 4  ;;  %s26_s15 = sshll.u32 %s242_s14, 4  ;;  %s18_s13 = int_to_ptr.vmem [resolvable:$true] %s17_s13  ;;  %s268_s15 = int_to_ptr.vmem [resolvable:$true] %s26_s15 }
   0x4   :  { %s169_s18 = scalar_lea.hbm %s314_s0, 128 }
   0x5   :  { %p170_p0 = scmp.ne.s32.totalorder %s314_s0, %s169_s18  ;;  %p173_p1 = scmp.lt.u32.totalorder %s169_s18, %s314_s0 }
   0x7   :  { %p175_p2 = pnand %p173_p1, %p170_p0 }
   0x9   :  { %178 = shalt.err (!%p175_p2)
}
   0xa   :  { %s179_s23 = scalar_lea.vmem %s18_s13, 128  ;;  %p184_p4 = scmp.lt.s32.totalorder %s18_s13, %s18_s13 }
   0xb   :  { %p180_p3 = scmp.ne.s32.totalorder %s18_s13, %s179_s23  ;;  %p185_p5 = scmp.lt.s32.totalorder %s179_s23, %s179_s23 }
   0xd   :  { %p186_p6 = por %p185_p5, %p184_p4 }
   0xf   :  { %p187_p7 = pnand %p186_p6, %p180_p3 }
  0x11   :  { %190 = shalt.err (!%p187_p7)
}
  0x12   :  { %20 = dma.hbm_to_vmem [thread:$0]  %s314_s0, 128, %s18_s13, [#allocation3]  }
  0x13   :  { %s191_s28 = scalar_lea.hbm %s315_s1, 256 }
  0x14   :  { %p192_p8 = scmp.ne.s32.totalorder %s315_s1, %s191_s28  ;;  %p195_p9 = scmp.lt.u32.totalorder %s191_s28, %s315_s1 }
  0x16   :  { %p197_p10 = pnand %p195_p9, %p192_p8 }
  0x18   :  { %200 = shalt.err (!%p197_p10)
}
  0x19   :  { %s201_s6 = scalar_lea.vmem %s268_s15, 256  ;;  %p206_p12 = scmp.lt.s32.totalorder %s268_s15, %s268_s15 }
  0x1a   :  { %p202_p11 = scmp.ne.s32.totalorder %s268_s15, %s201_s6  ;;  %p207_p13 = scmp.lt.s32.totalorder %s201_s6, %s201_s6 }
  0x1c   :  { %p208_p0 = por %p207_p13, %p206_p12 }
  0x1e   :  { %p209_p1 = pnand %p208_p0, %p202_p11 }
  0x20   :  { %212 = shalt.err (!%p209_p1)
}
  0x21   :  { %s243_s0 = smov 64   ;;  %s244_s7 = smov 4  }
  0x22   :  { %32 = dma.hbm_to_vmem [thread:$0]  %s315_s1, 256, %s268_s15, [#allocation6], %s243_s0, %s243_s0, %s244_s7  }
  0x23   :  { %235 = dma.done.wait [#allocation3], 128  }
  0x24   :  { %236 = vsyncadd [#allocation3], 4294967168 }
  0x25   :  { %237 = dma.done.wait [#allocation6], 256  }
  0x26   :  { %238 = vsyncadd [#allocation6], 4294967040  ;;  %v245_v0 = vmov 0.0   ;;  %vm246_vm0 = vmmov 0   ;;  %v163_v1 = vld [vmem:[#allocation5] sm:$0xff]   ;;  %v164_v2 = vld [vmem:[#allocation5 + $0x8] sm:$0xff]  }
  0x27   :  { %148 = vmatprep.subr.bf16.mxu0 %v245_v0  ;;  %152 = vmatprep.mubr.msk.bf16.mxu0 %vm246_vm0, %v245_v0  ;;  %v42_v3 = vld [vmem:[#allocation2] sm:$0xff]  ;;  %vm67_vm1 = vcmask 261120   ;;  %s247_s1 = smov [#allocation7]  }
  0x28   :  { %149 = vmatpush3.bf16.msra.mxu0 %v163_v1  ;;  %v43_v4 = vpack.c.bf16 %v42_v3, %v42_v3  ;;  %v141_v5 = vld [vmem:[%s316_s2] ss:$0 sm:$0xff]  ;;  %s131_s2 = sshll.u32 %s247_s1, 4  ;;  %s132_s2 = int_to_ptr.vmem [resolvable:$true] %s131_s2 }
  0x29   :  { %150 = vmatprep.subr.bf16.mxu0 %v245_v0  ;;  %s213_s12 = scalar_lea.vmem %s132_s2, 64  ;;  %p218_p3 = scmp.lt.s32.totalorder %s132_s2, %s132_s2 }
  0x2a   :  { %p214_p2 = scmp.ne.s32.totalorder %s132_s2, %s213_s12  ;;  %p219_p4 = scmp.lt.s32.totalorder %s213_s12, %s213_s12 }
  0x2c   :  { %151 = vmatpush3.bf16.msra.mxu0 %v164_v2  ;;  %p220_p5 = por %p219_p4, %p218_p3 }
  0x2e   :  { %p221_p6 = pnand %p220_p5, %p214_p2 }
  0x2f   :  { %153 = vmatmul.mubr.msk.bf16.vlgmr.msra.gmra.mrb[0].mxu0 %vm67_vm1, %v43_v4 }
 0x102   :  { %v105_v6 = vpop.f32.mrb[0].mxu0 }
 0x103   :  { %v106_v7 = vadd.f32 %v141_v5, %v105_v6  ;;  %v154_v8 = vpop.f32.mrb[1].mxu0 }
 0x104   :  { %v108_v9 = vpop.f32.mrb[2].mxu0 }
 0x105   :  { %111 = vmax.xlane.f32.xlu0 %v106_v7  ;;  %v155_v10 = vpop.f32.mrb[3].mxu0 }
 0x192   :  { %v112_v11 = vpop.xlane.xlu0 %111 }
 0x193   :  { %v113_v12 = vsub.f32 %v106_v7, %v112_v11 }
 0x195   :  { %v114_v13 = vmul.f32 1.442695, %v113_v12 }
 0x197   :  { %165 = vpow2.f32 %v114_v13 }
 0x1a1   :  { %v166_v14 = vpop.eup %165 }
 0x1a2   :  { %116 = vadd.xlane.f32.xlu0 %v166_v14 }
 0x22f   :  { %v117_v15 = vpop.xlane.xlu0 %116 }
 0x230   :  { %167 = vrcp.f32 %v117_v15 }
 0x23a   :  { %v168_v16 = vpop.eup %167 }
 0x23b   :  { %v119_v17 = vmul.f32 %v168_v16, %v117_v15 }
 0x23d   :  { %v120_v18 = vsub.f32 2.0, %v119_v17 }
 0x23f   :  { %v121_v19 = vmul.f32 %v168_v16, %v120_v18 }
 0x241   :  { %v122_v20 = vmul.f32 %v166_v14, %v121_v19 }
 0x243   :  { %v123_v21 = vpack.c.bf16 %v122_v20, %v122_v20 }
 0x245   :  { %124 = vst [vmem:[#allocation7] sm:$0xf] %v123_v21 }
 0x246   :  { %224 = shalt.err (!%p221_p6)
}
 0x247   :  { %s225_s15 = scalar_lea.hbm %s317_s3, 64 }
 0x248   :  { %p226_p7 = scmp.ne.s32.totalorder %s317_s3, %s225_s15  ;;  %p229_p8 = scmp.lt.u32.totalorder %s225_s15, %s317_s3 }
 0x24a   :  { %p231_p9 = pnand %p229_p8, %p226_p7 }
 0x24c   :  { %234 = shalt.err (!%p231_p9)
}
 0x24d   :  { %134 = dma.vmem_to_hbm [thread:$0]  %s132_s2, 64, %s317_s3, [#allocation4]  }
 0x24e   :  { %239 = dma.done.wait [#allocation4], 64  }
 0x24f   :  { %240 = vsyncadd [#allocation4], 4294967232 }
 0x250   :  { %138 = vsyncpa [#allocation3], 1 }
 0x251   :  { %139 = vsyncpa [#allocation6], 1 }
 0x252   :  { %140 = vsyncpa [#allocation4], 1 }

// kernel: tpu_custom_call.1
= control target key start
LH: loop header
LB: loop body
LE: loop exit
PB: predicated region body
PF: predicated region fallthrough
CT: control target
= control target key end

     0   :  { %8 = vsyncpa [#allocation3], 0  ;;  %s314_s0 = inlined_call_operand.hbm [shape: f32[6,32], index: 0, kind: input, shape index: {}]   ;;  %s315_s1 = inlined_call_operand.hbm [shape: bf16[32,128], index: 1, kind: input, shape index: {}]   ;;  %s316_s2 = inlined_call_operand.vmem [shape: f32[1,128], index: 2, kind: input, shape index: {}]   ;;  %s317_s3 = inlined_call_operand.hbm [shape: bf16[6,128], index: 3, kind: output, shape index: {}]  }
   0x1   :  { %9 = vsyncpa [#allocation6], 0 }
   0x2   :  { %10 = vsyncpa [#allocation4], 0  ;;  %s241_s12 = smov [#allocation2]   ;;  %s242_s14 = smov [#allocation5]  }
   0x3   :  { %s17_s13 = sshll.u32 %s241_s12, 4  ;;  %s26_s15 = sshll.u32 %s242_s14, 4  ;;  %s18_s13 = int_to_ptr.vmem [resolvable:$true] %s17_s13  ;;  %s268_s15 = int_to_ptr.vmem [resolvable:$true] %s26_s15 }
   0x4   :  { %s169_s18 = scalar_lea.hbm %s314_s0, 128 }
   0x5   :  { %p170_p0 = scmp.ne.s32.totalorder %s314_s0, %s169_s18  ;;  %p173_p1 = scmp.lt.u32.totalorder %s169_s18, %s314_s0 }
   0x7   :  { %p175_p2 = pnand %p173_p1, %p170_p0 }
   0x9   :  { %178 = shalt.err (!%p175_p2)
}
   0xa   :  { %s179_s23 = scalar_lea.vmem %s18_s13, 128  ;;  %p184_p4 = scmp.lt.s32.totalorder %s18_s13, %s18_s13 }
   0xb   :  { %p180_p3 = scmp.ne.s32.totalorder %s18_s13, %s179_s23  ;;  %p185_p5 = scmp.lt.s32.totalorder %s179_s23, %s179_s23 }
   0xd   :  { %p186_p6 = por %p185_p5, %p184_p4 }
   0xf   :  { %p187_p7 = pnand %p186_p6, %p180_p3 }
  0x11   :  { %190 = shalt.err (!%p187_p7)
}
  0x12   :  { %20 = dma.hbm_to_vmem [thread:$0]  %s314_s0, 128, %s18_s13, [#allocation3]  }
  0x13   :  { %s191_s28 = scalar_lea.hbm %s315_s1, 256 }
  0x14   :  { %p192_p8 = scmp.ne.s32.totalorder %s315_s1, %s191_s28  ;;  %p195_p9 = scmp.lt.u32.totalorder %s191_s28, %s315_s1 }
  0x16   :  { %p197_p10 = pnand %p195_p9, %p192_p8 }
  0x18   :  { %200 = shalt.err (!%p197_p10)
}
  0x19   :  { %s201_s6 = scalar_lea.vmem %s268_s15, 256  ;;  %p206_p12 = scmp.lt.s32.totalorder %s268_s15, %s268_s15 }
  0x1a   :  { %p202_p11 = scmp.ne.s32.totalorder %s268_s15, %s201_s6  ;;  %p207_p13 = scmp.lt.s32.totalorder %s201_s6, %s201_s6 }
  0x1c   :  { %p208_p0 = por %p207_p13, %p206_p12 }
  0x1e   :  { %p209_p1 = pnand %p208_p0, %p202_p11 }
  0x20   :  { %212 = shalt.err (!%p209_p1)
}
  0x21   :  { %s243_s0 = smov 64   ;;  %s244_s7 = smov 4  }
  0x22   :  { %32 = dma.hbm_to_vmem [thread:$0]  %s315_s1, 256, %s268_s15, [#allocation6], %s243_s0, %s243_s0, %s244_s7  }
  0x23   :  { %235 = dma.done.wait [#allocation3], 128  }
  0x24   :  { %236 = vsyncadd [#allocation3], 4294967168 }
  0x25   :  { %237 = dma.done.wait [#allocation6], 256  }
  0x26   :  { %238 = vsyncadd [#allocation6], 4294967040  ;;  %v245_v0 = vmov 0.0   ;;  %vm246_vm0 = vmmov 0   ;;  %v163_v1 = vld [vmem:[#allocation5] sm:$0xff]   ;;  %v164_v2 = vld [vmem:[#allocation5 + $0x8] sm:$0xff]  }
  0x27   :  { %148 = vmatprep.subr.bf16.mxu0 %v245_v0  ;;  %152 = vmatprep.mubr.msk.bf16.mxu0 %vm246_vm0, %v245_v0  ;;  %v42_v3 = vld [vmem:[#allocation2] sm:$0xff]  ;;  %vm67_vm1 = vcmask 261120   ;;  %s247_s1 = smov [#allocation7]  }
  0x28   :  { %149 = vmatpush3.bf16.msra.mxu0 %v163_v1  ;;  %v43_v4 = vpack.c.bf16 %v42_v3, %v42_v3  ;;  %v141_v5 = vld [vmem:[%s316_s2] ss:$0 sm:$0xff]  ;;  %s131_s2 = sshll.u32 %s247_s1, 4  ;;  %s132_s2 = int_to_ptr.vmem [resolvable:$true] %s131_s2 }
  0x29   :  { %150 = vmatprep.subr.bf16.mxu0 %v245_v0  ;;  %s213_s12 = scalar_lea.vmem %s132_s2, 64  ;;  %p218_p3 = scmp.lt.s32.totalorder %s132_s2, %s132_s2 }
  0x2a   :  { %p214_p2 = scmp.ne.s32.totalorder %s132_s2, %s213_s12  ;;  %p219_p4 = scmp.lt.s32.totalorder %s213_s12, %s213_s12 }
  0x2c   :  { %151 = vmatpush3.bf16.msra.mxu0 %v164_v2  ;;  %p220_p5 = por %p219_p4, %p218_p3 }
  0x2e   :  { %p221_p6 = pnand %p220_p5, %p214_p2 }
  0x2f   :  { %153 = vmatmul.mubr.msk.bf16.vlgmr.msra.gmra.mrb[0].mxu0 %vm67_vm1, %v43_v4 }
 0x102   :  { %v105_v6 = vpop.f32.mrb[0].mxu0 }
 0x103   :  { %v106_v7 = vadd.f32 %v141_v5, %v105_v6  ;;  %v154_v8 = vpop.f32.mrb[1].mxu0 }
 0x104   :  { %v108_v9 = vpop.f32.mrb[2].mxu0 }
 0x105   :  { %111 = vmax.xlane.f32.xlu0 %v106_v7  ;;  %v155_v10 = vpop.f32.mrb[3].mxu0 }
 0x192   :  { %v112_v11 = vpop.xlane.xlu0 %111 }
 0x193   :  { %v113_v12 = vsub.f32 %v106_v7, %v112_v11 }
 0x195   :  { %v114_v13 = vmul.f32 1.442695, %v113_v12 }
 0x197   :  { %165 = vpow2.f32 %v114_v13 }
 0x1a1   :  { %v166_v14 = vpop.eup %165 }
 0x1a2   :  { %116 = vadd.xlane.f32.xlu0 %v166_v14 }
 0x22f   :  { %v117_v15 = vpop.xlane.xlu0 %116 }
 0x230   :  { %167 = vrcp.f32 %v117_v15 }
 0x23a   :  { %v168_v16 = vpop.eup %167 }
 0x23b   :  { %v119_v17 = vmul.f32 %v168_v16, %v117_v15 }
 0x23d   :  { %v120_v18 = vsub.f32 2.0, %v119_v17 }
 0x23f   :  { %v121_v19 = vmul.f32 %v168_v16, %v120_v18 }
 0x241   :  { %v122_v20 = vmul.f32 %v166_v14, %v121_v19 }
 0x243   :  { %v123_v21 = vpack.c.bf16 %v122_v20, %v122_v20 }
 0x245   :  { %124 = vst [vmem:[#allocation7] sm:$0xf] %v123_v21 }
 0x246   :  { %224 = shalt.err (!%p221_p6)
}
 0x247   :  { %s225_s15 = scalar_lea.hbm %s317_s3, 64 }
 0x248   :  { %p226_p7 = scmp.ne.s32.totalorder %s317_s3, %s225_s15  ;;  %p229_p8 = scmp.lt.u32.totalorder %s225_s15, %s317_s3 }
 0x24a   :  { %p231_p9 = pnand %p229_p8, %p226_p7 }
 0x24c   :  { %234 = shalt.err (!%p231_p9)
}
 0x24d   :  { %134 = dma.vmem_to_hbm [thread:$0]  %s132_s2, 64, %s317_s3, [#allocation4]  }
 0x24e   :  { %239 = dma.done.wait [#allocation4], 64  }
 0x24f   :  { %240 = vsyncadd [#allocation4], 4294967232 }
 0x250   :  { %138 = vsyncpa [#allocation3], 1 }
 0x251   :  { %139 = vsyncpa [#allocation6], 1 }
 0x252   :  { %140 = vsyncpa [#allocation4], 1 }

</bundles_post_ra>
